<compile_context>
chip_gen: v5e
topology: v5e:2x2
jax: 0.10.0
libtpu: 0.0.40
codegen_flags: <defaults>
</compile_context>

<pallas_src>
import functools

import jax
import jax.numpy as jnp
import numpy as np
from jax.experimental import pallas as pl
from jax.experimental.pallas import tpu as pltpu

TAU = 3.0
INV_TAU = 1.0 / TAU
ALPHA = 0.5
LABEL_SMOOTHING = 0.1
_NEG = -1e30  # finite "-inf" for masked (padded) class columns


def _round_up(x, m):
    return ((x + m - 1) // m) * m


def _cdiv(a, b):
    return -(-a // b)


def _device_profile():
    """Per-generation tiling / VMEM budgets (conservative when unknown)."""
    try:
        kind = jax.devices()[0].device_kind.lower()
    except Exception:  # pragma: no cover
        kind = ""
    big_vmem = any(t in kind for t in
                   ("v5 lite", "v5e", "v5litepod", "v6e", "v6 lite", "trillium"))
    if big_vmem:
        # v5e / v6e: 128 MiB physical VMEM -> large tiles, fewer grid steps.
        return dict(tb_cap=512, budget=64 << 20, vmem_limit=100 << 20, max_tk=4096)
    # v7x (64 MiB physical VMEM), CPU interpreter, unknown: conservative.
    return dict(tb_cap=256, budget=24 << 20, vmem_limit=48 << 20, max_tk=2048)


def _epilogue(i, acc_ref, b_ref, cls_ref, dist_ref, lab_ref, out_ref, *,
              num_classes, batch, block_b, sub_b):
    """Softmax / KL / CE partial sums over one batch block, in <=128-row chunks."""
    ncp = acc_ref.shape[1]
    n_chunks = block_b // sub_b

    # Hoisted invariants (don't rebuild broadcasts per chunk).
    col = jax.lax.broadcasted_iota(jnp.int32, (sub_b, ncp), 1)
    col_ok = col < num_classes                       # mask padded class lanes
    bias = b_ref[...]                                # (1, ncp) f32
    inv_nc = 1.0 / num_classes

    kl_total = jnp.zeros((), jnp.float32)
    ce_total = jnp.zeros((), jnp.float32)

    for c in range(n_chunks):
        r0 = c * sub_b
        rows = i * block_b + r0 + jax.lax.broadcasted_iota(jnp.int32, (sub_b, 1), 0)
        row_ok = rows < batch                        # mask padded batch rows

        # Teacher soft targets: one exp pass reused for p_t and log_p_t.
        t_z = jnp.where(col_ok, (acc_ref[r0:r0 + sub_b, :] + bias) * INV_TAU, _NEG)
        t_m = jnp.max(t_z, axis=-1, keepdims=True)
        t_e = jnp.exp(t_z - t_m)
        t_s = jnp.sum(t_e, axis=-1, keepdims=True)
        log_p_t = (t_z - t_m) - jnp.log(t_s)
        # TODO(synk): use pl.reciprocal(t_s, approx=True) on real TPU (EUP slot);
        # plain divide kept for interpreter compatibility.
        p_t = t_e / t_s

        # Student distillation-token log-softmax (temperature-scaled).
        s_z = jnp.where(col_ok, dist_ref[r0:r0 + sub_b, :] * INV_TAU, _NEG)
        s_m = jnp.max(s_z, axis=-1, keepdims=True)
        log_p_s = (s_z - s_m) - jnp.log(
            jnp.sum(jnp.exp(s_z - s_m), axis=-1, keepdims=True))

        # KL(log_p_s || log_p_t), reduction='sum', log_target=True (unscaled).
        kl = jnp.where(col_ok & row_ok, p_t * (log_p_t - log_p_s), 0.0)
        kl_total = kl_total + jnp.sum(kl)

        # Label-smoothed cross-entropy on the cls token.
        c_z = jnp.where(col_ok, cls_ref[r0:r0 + sub_b, :], _NEG)
        c_m = jnp.max(c_z, axis=-1, keepdims=True)
        log_p_c = (c_z - c_m) - jnp.log(
            jnp.sum(jnp.exp(c_z - c_m), axis=-1, keepdims=True))

        onehot = col == lab_ref[r0:r0 + sub_b, :]    # in-kernel one-hot from int32
        nll = -jnp.sum(jnp.where(onehot, log_p_c, 0.0), axis=-1, keepdims=True)
        smooth = -jnp.sum(jnp.where(col_ok, log_p_c, 0.0),
                          axis=-1, keepdims=True) * inv_nc
        ce = (1.0 - LABEL_SMOOTHING) * nll + LABEL_SMOOTHING * smooth
        ce_total = ce_total + jnp.sum(jnp.where(row_ok, ce, 0.0))

    # Lane-dense (1,8,128) output tile: [0,0,0]=KL partial, [0,0,1]=CE partial.
    sub = jax.lax.broadcasted_iota(jnp.int32, (1, 8, 128), 1)
    lane = jax.lax.broadcasted_iota(jnp.int32, (1, 8, 128), 2)
    out_ref[...] = jnp.where(
        (sub == 0) & (lane == 0), kl_total,
        jnp.where((sub == 0) & (lane == 1), ce_total, 0.0))


def _soft_loss_kernel(x_ref, w_ref, b_ref, cls_ref, dist_ref, lab_ref,
                      out_ref, acc_ref, *, num_classes, batch, block_b, sub_b, nk):
    # Grid ids read ONCE at top level (never inside pl.when bodies).
    i = pl.program_id(0)   # batch-block index
    k = pl.program_id(1)   # contraction-tile index

    # Teacher forward: bf16 x @ bf16 W with f32 MXU accumulation.
    prod = jnp.dot(x_ref[...], w_ref[...], preferred_element_type=jnp.float32)

    @pl.when(k == 0)
    def _():
        acc_ref[...] = prod            # first tile writes directly (no zero-init pass)

    @pl.when(k > 0)
    def _():
        acc_ref[...] += prod

    @pl.when(k == nk - 1)
    def _():
        _epilogue(i, acc_ref, b_ref, cls_ref, dist_ref, lab_ref, out_ref,
                  num_classes=num_classes, batch=batch,
                  block_b=block_b, sub_b=sub_b)


def prepare_teacher_head(w_t, b_t):
    """One-time pad/cast of the fixed teacher linear head.

    Call this OUTSIDE the training step: w_t is frozen, so the f32->bf16 cast
    and 128-alignment padding must not be paid every step.
    """
    D, NC = w_t.shape
    D_pad, NC_pad = _round_up(D, 128), _round_up(NC, 128)
    w_pad = jnp.pad(w_t, ((0, D_pad - D), (0, NC_pad - NC))).astype(jnp.bfloat16)
    b_pad = jnp.pad(b_t.astype(jnp.float32).reshape(1, NC),
                    ((0, 0), (0, NC_pad - NC)))
    return w_pad, b_pad


def soft_loss_deit(cls_tok, dist_tok, teacher_x, labels, w_pad, b_pad, *, max_tk=None):
    """Returns (L_total, L_cls, L_distill) as float32 scalars."""
    B, NC = cls_tok.shape
    D = int(np.prod(teacher_x.shape[1:]))
    D_pad, NC_pad = w_pad.shape
    assert D_pad == _round_up(D, 128) and NC_pad == _round_up(NC, 128), \
        "w_pad/b_pad must come from prepare_teacher_head()"

    prof = _device_profile()
    if max_tk is None:
        max_tk = prof["max_tk"]

    # Batch tile: as large as the chip allows (fewer re-streams of the DxNC
    # teacher weight), but aim for >=2 batch blocks so both v7x TensorCores
    # get work on the "parallel" axis.  Multiple of 16 (packed bf16 sublanes),
    # multiple of 128 once large (simple 128-row epilogue chunking).
    TB = min(prof["tb_cap"], max(16, _round_up(_cdiv(B, 2), 16)))
    if TB > 128:
        TB = max(128, (TB // 128) * 128)
    B_pad = _round_up(B, TB)
    nb = B_pad // TB
    SUB = TB if TB <= 128 else 128

    # K tile from the per-chip double-buffer budget, snapped down so it divides
    # D_pad exactly (D_pad is always a multiple of 128).
    tk = prof["budget"] // (8 * (TB + NC_pad))
    tk = max(128, (tk // 128) * 128)
    TK = min(tk, max_tk, D_pad)
    while D_pad % TK:
        TK -= 128
    nk = D_pad // TK

    # Teacher input: keep bf16, flatten; only pad/copy when shapes require it
    # (never for real DeiT sizes: D=3*224*224 is a multiple of 128 and B a
    # multiple of TB).
    x2 = teacher_x.reshape(B, D)
    if x2.dtype != jnp.bfloat16:
        # TODO(synk): feed bf16 teacher images from upstream to skip this cast.
        x2 = x2.astype(jnp.bfloat16)
    if B_pad != B or D_pad != D:
        x2 = jnp.pad(x2, ((0, B_pad - B), (0, D_pad - D)))

    def _pad2(a, r, c):
        return jnp.pad(a, ((0, r - a.shape[0]), (0, c - a.shape[1])))

    cls_p = _pad2(cls_tok.astype(jnp.float32), B_pad, NC_pad)
    dist_p = _pad2(dist_tok.astype(jnp.float32), B_pad, NC_pad)
    lab_p = jnp.pad(labels.astype(jnp.int32), (0, B_pad - B)).reshape(B_pad, 1)

    kernel = functools.partial(_soft_loss_kernel, num_classes=NC, batch=B,
                               block_b=TB, sub_b=SUB, nk=nk)

    partials = pl.pallas_call(
        kernel,
        out_shape=jax.ShapeDtypeStruct((nb, 8, 128), jnp.float32),
        grid=(nb, nk),
        in_specs=[
            pl.BlockSpec((TB, TK), lambda i, k: (i, k)),       # x       (bf16)
            pl.BlockSpec((TK, NC_pad), lambda i, k: (k, 0)),   # W       (bf16)
            pl.BlockSpec((1, NC_pad), lambda i, k: (0, 0)),    # bias    (f32)
            pl.BlockSpec((TB, NC_pad), lambda i, k: (i, 0)),   # cls     (f32)
            pl.BlockSpec((TB, NC_pad), lambda i, k: (i, 0)),   # distill (f32)
            pl.BlockSpec((TB, 1), lambda i, k: (i, 0)),        # labels  (int32)
        ],
        out_specs=pl.BlockSpec((1, 8, 128), lambda i, k: (i, 0, 0)),
        scratch_shapes=[pltpu.VMEM((TB, NC_pad), jnp.float32)],
        compiler_params=pltpu.CompilerParams(
            dimension_semantics=("parallel", "arbitrary"),
            vmem_limit_bytes=prof["vmem_limit"],
        ),
    )(x2, w_pad, b_pad, cls_p, dist_p, lab_p)

    kl_sum = jnp.sum(partials[:, 0, 0])
    ce_sum = jnp.sum(partials[:, 0, 1])
    l_distill = kl_sum * (TAU * TAU) / (B * NC)
    l_cls = ce_sum / B
    l_total = l_cls * (1.0 - ALPHA) + l_distill * ALPHA
    return l_total, l_cls, l_distill


def _reference(cls_tok, dist_tok, teacher_x, labels, w_t, b_t):
    """Pure-JAX reference (teacher matmul in bf16/f32-acc to match the kernel)."""
    B, NC = cls_tok.shape
    x = teacher_x.reshape(B, -1).astype(jnp.bfloat16)
    teacher_logits = jnp.dot(x, w_t.astype(jnp.bfloat16),
                             preferred_element_type=jnp.float32) + b_t
    log_p_s = jax.nn.log_softmax(dist_tok / TAU, axis=1)
    log_p_t = jax.nn.log_softmax(teacher_logits / TAU, axis=1)
    kl = jnp.sum(jnp.exp(log_p_t) * (log_p_t - log_p_s))
    l_distill = kl * (TAU * TAU) / (B * NC)
    log_p_c = jax.nn.log_softmax(cls_tok, axis=1)
    onehot = jax.nn.one_hot(labels, NC)
    nll = -jnp.sum(onehot * log_p_c, axis=1)
    smooth = -jnp.mean(log_p_c, axis=1)
    l_cls = jnp.mean((1.0 - LABEL_SMOOTHING) * nll + LABEL_SMOOTHING * smooth)
    l_total = l_cls * (1.0 - ALPHA) + l_distill * ALPHA
    return l_total, l_cls, l_distill


if __name__ == "__main__":
    key = jax.random.PRNGKey(0)
    k1, k2, k3, k4, k5 = jax.random.split(key, 5)

    B, C, H, W = 8, 4, 16, 16
    NC = 32                      # num classes
    D = C * H * W

    # Student tokens (cls, distill) and batch (teacher input images, labels).
    cls_tok = jax.random.normal(k1, (B, NC), dtype=jnp.float32)
    dist_tok = jax.random.normal(k2, (B, NC), dtype=jnp.float32)
    teacher_x = jax.random.normal(k3, (B, C, H, W), dtype=jnp.float32)
    labels = jax.random.randint(k4, (B,), 0, NC, dtype=jnp.int32)

    # Deterministic synthetic teacher parameters (linear head on flattened input).
    # TODO(synk): an arbitrary teacher nn.Module is realized here as a linear head.
    w_t = 0.02 * jax.random.normal(k5, (D, NC), dtype=jnp.float32)
    b_t = jnp.zeros((NC,), dtype=jnp.float32)

    # One-time teacher-head preparation (outside the training step).
    w_pad, b_pad = prepare_teacher_head(w_t, b_t)

    # max_tk=256 exercises the K-tiled accumulation path (nk=4) at small D.
    l_total, l_cls, l_distill = soft_loss_deit(
        cls_tok, dist_tok, teacher_x, labels, w_pad, b_pad, max_tk=256
    )
    jax.block_until_ready((l_total, l_cls, l_distill))

    ref_total, ref_cls, ref_dist = _reference(
        cls_tok, dist_tok, teacher_x, labels, w_t, b_t
    )
    np.testing.assert_allclose(np.asarray(l_total), np.asarray(ref_total), atol=1e-4, rtol=1e-4)
    np.testing.assert_allclose(np.asarray(l_cls), np.asarray(ref_cls), atol=1e-4, rtol=1e-4)
    np.testing.assert_allclose(np.asarray(l_distill), np.asarray(ref_dist), atol=1e-4, rtol=1e-4)

    print("KERNEL_OK")
</pallas_src>

<mosaic_0001>
module attributes {stable_mosaic.version = 11 : i64} {
  func.func @_soft_loss_kernel(%arg0: i32, %arg1: i32, %arg2: memref<16x256xbf16, #tpu.memory_space<vmem>>, %arg3: memref<256x128xbf16, #tpu.memory_space<vmem>>, %arg4: memref<1x128xf32, #tpu.memory_space<vmem>>, %arg5: memref<16x128xf32, #tpu.memory_space<vmem>>, %arg6: memref<16x128xf32, #tpu.memory_space<vmem>>, %arg7: memref<16x1xi32, #tpu.memory_space<vmem>>, %arg8: memref<1x8x128xf32, #tpu.memory_space<vmem>>, %arg9: memref<16x128xf32, #tpu.memory_space<vmem>>) attributes {dimension_semantics = [#tpu.dimension_semantics<parallel>, #tpu.dimension_semantics<arbitrary>], iteration_bounds = array<i64: 1, 4>, scalar_prefetch = 0 : i64, scratch_operands = 1 : i64, tpu.core_type = #tpu.core_type<tc>, window_params = [{transform_indices = @transform_0, window_bounds = array<i64: 16, 256>}, {transform_indices = @transform_1, window_bounds = array<i64: 256, 128>}, {pipeline_mode = #tpu.pipeline_mode<synchronous>, transform_indices = @transform_2, window_bounds = array<i64: 1, 128>}, {transform_indices = @transform_3, window_bounds = array<i64: 16, 128>}, {transform_indices = @transform_4, window_bounds = array<i64: 16, 128>}, {transform_indices = @transform_5, window_bounds = array<i64: 16, 1>}, {transform_indices = @transform_6, window_bounds = array<i64: 1, 8, 128>}]} {
    %c0 = arith.constant 0 : index
    %c0_0 = arith.constant 0 : index
    %0 = vector.load %arg2[%c0, %c0_0] : memref<16x256xbf16, #tpu.memory_space<vmem>>, vector<16x256xbf16>
    %c0_1 = arith.constant 0 : index
    %c0_2 = arith.constant 0 : index
    %1 = vector.load %arg3[%c0_1, %c0_2] : memref<256x128xbf16, #tpu.memory_space<vmem>>, vector<256x128xbf16>
    %cst = arith.constant dense<0.000000e+00> : vector<16x128xf32>
    %2 = tpu.matmul %0, %1, %cst {dimension_numbers = #tpu.dot_dimension_numbers<[1], [0], [0], [1], [0, 0, 1, 1], [], []>} : vector<16x256xbf16>, vector<256x128xbf16>, vector<16x128xf32> -> vector<16x128xf32>
    %c0_i32 = arith.constant 0 : i32
    %3 = arith.cmpi eq, %arg1, %c0_i32 : i32
    %4 = arith.extui %3 : i1 to i32
    %c0_i32_3 = arith.constant 0 : i32
    %5 = arith.cmpi ne, %4, %c0_i32_3 : i32
    scf.if %5 {
      %c0_7 = arith.constant 0 : index
      %c0_8 = arith.constant 0 : index
      %12 = vector.load %arg9[%c0_7, %c0_8] : memref<16x128xf32, #tpu.memory_space<vmem>>, vector<16x128xf32>
      tpu.vector_store %arg9[%c0_7, %c0_8], %2 {strides = array<i32>} : memref<16x128xf32, #tpu.memory_space<vmem>>, vector<16x128xf32>,
    } else {
    }
    %c0_i32_4 = arith.constant 0 : i32
    %6 = arith.cmpi sgt, %arg1, %c0_i32_4 : i32
    %7 = arith.extui %6 : i1 to i32
    %c0_i32_5 = arith.constant 0 : i32
    %8 = arith.cmpi ne, %7, %c0_i32_5 : i32
    scf.if %8 {
      %c0_7 = arith.constant 0 : index
      %c0_8 = arith.constant 0 : index
      %12 = vector.load %arg9[%c0_7, %c0_8] : memref<16x128xf32, #tpu.memory_space<vmem>>, vector<16x128xf32>
      %13 = arith.addf %12, %2 : vector<16x128xf32>
      %c0_9 = arith.constant 0 : index
      %c0_10 = arith.constant 0 : index
      %14 = vector.load %arg9[%c0_9, %c0_10] : memref<16x128xf32, #tpu.memory_space<vmem>>, vector<16x128xf32>
      tpu.vector_store %arg9[%c0_9, %c0_10], %13 {strides = array<i32>} : memref<16x128xf32, #tpu.memory_space<vmem>>, vector<16x128xf32>,
    } else {
    }
    %c3_i32 = arith.constant 3 : i32
    %9 = arith.cmpi eq, %arg1, %c3_i32 : i32
    %10 = arith.extui %9 : i1 to i32
    %c0_i32_6 = arith.constant 0 : i32
    %11 = arith.cmpi ne, %10, %c0_i32_6 : i32
    scf.if %11 {
      %12 = tpu.iota {dimensions = array<i32: 1>} : vector<16x128xi32>
      %c32_i32 = arith.constant 32 : i32
      %13 = vector.broadcast %c32_i32 : i32 to vector<16x128xi32>
      %14 = arith.cmpi slt, %12, %13 : vector<16x128xi32>
      %c0_7 = arith.constant 0 : index
      %c0_8 = arith.constant 0 : index
      %15 = vector.load %arg4[%c0_7, %c0_8] : memref<1x128xf32, #tpu.memory_space<vmem>>, vector<1x128xf32>
      %c16_i32 = arith.constant 16 : i32
      %16 = arith.muli %arg0, %c16_i32 : i32
      %c0_i32_9 = arith.constant 0 : i32
      %17 = arith.addi %16, %c0_i32_9 : i32
      %18 = tpu.iota {dimensions = array<i32: 0>} : vector<16x1xi32>
      %19 = vector.broadcast %17 : i32 to vector<16x1xi32>
      %20 = arith.addi %19, %18 : vector<16x1xi32>
      %c8_i32 = arith.constant 8 : i32
      %21 = vector.broadcast %c8_i32 : i32 to vector<16x1xi32>
      %22 = arith.cmpi slt, %20, %21 : vector<16x1xi32>
      %c0_10 = arith.constant 0 : index
      %c0_11 = arith.constant 0 : index
      %23 = vector.load %arg9[%c0_10, %c0_11] : memref<16x128xf32, #tpu.memory_space<vmem>>, vector<16x128xf32>
      %24 = vector.broadcast %15 : vector<1x128xf32> to vector<16x128xf32>
      %25 = arith.addf %23, %24 : vector<16x128xf32>
      %cst_12 = arith.constant 0.333333343 : f32
      %26 = vector.broadcast %cst_12 : f32 to vector<16x128xf32>
      %27 = arith.mulf %25, %26 : vector<16x128xf32>
      %cst_13 = arith.constant -1.000000e+30 : f32
      %28 = vector.broadcast %cst_13 : f32 to vector<16x128xf32>
      %29 = arith.select %14, %27, %28 : vector<16x128xi1>, vector<16x128xf32>
      %cst_14 = arith.constant dense<0xFF800000> : vector<16xf32>
      %30 = vector.multi_reduction <maximumf>, %29, %cst_14 [1] : vector<16x128xf32> to vector<16xf32>
      %31 = vector.shape_cast %30 : vector<16xf32> to vector<16x1xf32>
      %32 = vector.broadcast %31 : vector<16x1xf32> to vector<16x128xf32>
      %33 = arith.subf %29, %32 : vector<16x128xf32>
      %34 = math.exp %33 : vector<16x128xf32>
      %cst_15 = arith.constant dense<0.000000e+00> : vector<16xf32>
      %35 = vector.multi_reduction <add>, %34, %cst_15 [1] : vector<16x128xf32> to vector<16xf32>
      %36 = vector.shape_cast %35 : vector<16xf32> to vector<16x1xf32>
      %37 = vector.broadcast %31 : vector<16x1xf32> to vector<16x128xf32>
      %38 = arith.subf %29, %37 : vector<16x128xf32>
      %39 = math.log %36 : vector<16x1xf32>
      %40 = vector.broadcast %39 : vector<16x1xf32> to vector<16x128xf32>
      %41 = arith.subf %38, %40 : vector<16x128xf32>
      %42 = vector.broadcast %36 : vector<16x1xf32> to vector<16x128xf32>
      %43 = arith.divf %34, %42 : vector<16x128xf32>
      %c0_16 = arith.constant 0 : index
      %c0_17 = arith.constant 0 : index
      %44 = vector.load %arg6[%c0_16, %c0_17] : memref<16x128xf32, #tpu.memory_space<vmem>>, vector<16x128xf32>
      %cst_18 = arith.constant 0.333333343 : f32
      %45 = vector.broadcast %cst_18 : f32 to vector<16x128xf32>
      %46 = arith.mulf %44, %45 : vector<16x128xf32>
      %cst_19 = arith.constant -1.000000e+30 : f32
      %47 = vector.broadcast %cst_19 : f32 to vector<16x128xf32>
      %48 = arith.select %14, %46, %47 : vector<16x128xi1>, vector<16x128xf32>
      %cst_20 = arith.constant dense<0xFF800000> : vector<16xf32>
      %49 = vector.multi_reduction <maximumf>, %48, %cst_20 [1] : vector<16x128xf32> to vector<16xf32>
      %50 = vector.shape_cast %49 : vector<16xf32> to vector<16x1xf32>
      %51 = vector.broadcast %50 : vector<16x1xf32> to vector<16x128xf32>
      %52 = arith.subf %48, %51 : vector<16x128xf32>
      %53 = vector.broadcast %50 : vector<16x1xf32> to vector<16x128xf32>
      %54 = arith.subf %48, %53 : vector<16x128xf32>
      %55 = math.exp %54 : vector<16x128xf32>
      %cst_21 = arith.constant dense<0.000000e+00> : vector<16xf32>
      %56 = vector.multi_reduction <add>, %55, %cst_21 [1] : vector<16x128xf32> to vector<16xf32>
      %57 = vector.shape_cast %56 : vector<16xf32> to vector<16x1xf32>
      %58 = math.log %57 : vector<16x1xf32>
      %59 = vector.broadcast %58 : vector<16x1xf32> to vector<16x128xf32>
      %60 = arith.subf %52, %59 : vector<16x128xf32>
      %61 = vector.broadcast %22 : vector<16x1xi1> to vector<16x128xi1>
      %62 = arith.andi %14, %61 : vector<16x128xi1>
      %63 = arith.subf %41, %60 : vector<16x128xf32>
      %64 = arith.mulf %43, %63 : vector<16x128xf32>
      %cst_22 = arith.constant 0.000000e+00 : f32
      %65 = vector.broadcast %cst_22 : f32 to vector<16x128xf32>
      %66 = arith.select %62, %64, %65 : vector<16x128xi1>, vector<16x128xf32>
      %67 = vector.shape_cast %66 : vector<16x128xf32> to vector<1x16x128xf32>
      %cst_23 = arith.constant dense<0.000000e+00> : vector<1xf32>
      %68 = vector.multi_reduction <add>, %67, %cst_23 [1, 2] : vector<1x16x128xf32> to vector<1xf32>
      %69 = vector.shape_cast %68 : vector<1xf32> to vector<1x1x1xf32>
      %70 = vector.extract %69[0, 0, 0] : f32 from vector<1x1x1xf32>
      %cst_24 = arith.constant 0.000000e+00 : f32
      %71 = arith.addf %cst_24, %70 : f32
      %c0_25 = arith.constant 0 : index
      %c0_26 = arith.constant 0 : index
      %72 = vector.load %arg5[%c0_25, %c0_26] : memref<16x128xf32, #tpu.memory_space<vmem>>, vector<16x128xf32>
      %cst_27 = arith.constant -1.000000e+30 : f32
      %73 = vector.broadcast %cst_27 : f32 to vector<16x128xf32>
      %74 = arith.select %14, %72, %73 : vector<16x128xi1>, vector<16x128xf32>
      %cst_28 = arith.constant dense<0xFF800000> : vector<16xf32>
      %75 = vector.multi_reduction <maximumf>, %74, %cst_28 [1] : vector<16x128xf32> to vector<16xf32>
      %76 = vector.shape_cast %75 : vector<16xf32> to vector<16x1xf32>
      %77 = vector.broadcast %76 : vector<16x1xf32> to vector<16x128xf32>
      %78 = arith.subf %74, %77 : vector<16x128xf32>
      %79 = vector.broadcast %76 : vector<16x1xf32> to vector<16x128xf32>
      %80 = arith.subf %74, %79 : vector<16x128xf32>
      %81 = math.exp %80 : vector<16x128xf32>
      %cst_29 = arith.constant dense<0.000000e+00> : vector<16xf32>
      %82 = vector.multi_reduction <add>, %81, %cst_29 [1] : vector<16x128xf32> to vector<16xf32>
      %83 = vector.shape_cast %82 : vector<16xf32> to vector<16x1xf32>
      %84 = math.log %83 : vector<16x1xf32>
      %85 = vector.broadcast %84 : vector<16x1xf32> to vector<16x128xf32>
      %86 = arith.subf %78, %85 : vector<16x128xf32>
      %c0_30 = arith.constant 0 : index
      %c0_31 = arith.constant 0 : index
      %87 = vector.load %arg7[%c0_30, %c0_31] : memref<16x1xi32, #tpu.memory_space<vmem>>, vector<16x1xi32>
      %88 = vector.broadcast %87 : vector<16x1xi32> to vector<16x128xi32>
      %89 = arith.cmpi eq, %12, %88 : vector<16x128xi32>
      %cst_32 = arith.constant 0.000000e+00 : f32
      %90 = vector.broadcast %cst_32 : f32 to vector<16x128xf32>
      %91 = arith.select %89, %86, %90 : vector<16x128xi1>, vector<16x128xf32>
      %cst_33 = arith.constant dense<0.000000e+00> : vector<16xf32>
      %92 = vector.multi_reduction <add>, %91, %cst_33 [1] : vector<16x128xf32> to vector<16xf32>
      %93 = vector.shape_cast %92 : vector<16xf32> to vector<16x1xf32>
      %cst_34 = arith.constant 0.000000e+00 : f32
      %94 = vector.broadcast %cst_34 : f32 to vector<16x1xf32>
      %95 = arith.subf %94, %93 : vector<16x1xf32>
      %cst_35 = arith.constant 0.000000e+00 : f32
      %96 = vector.broadcast %cst_35 : f32 to vector<16x128xf32>
      %97 = arith.select %14, %86, %96 : vector<16x128xi1>, vector<16x128xf32>
      %cst_36 = arith.constant dense<0.000000e+00> : vector<16xf32>
      %98 = vector.multi_reduction <add>, %97, %cst_36 [1] : vector<16x128xf32> to vector<16xf32>
      %99 = vector.shape_cast %98 : vector<16xf32> to vector<16x1xf32>
      %cst_37 = arith.constant 0.000000e+00 : f32
      %100 = vector.broadcast %cst_37 : f32 to vector<16x1xf32>
      %101 = arith.subf %100, %99 : vector<16x1xf32>
      %cst_38 = arith.constant 3.125000e-02 : f32
      %102 = vector.broadcast %cst_38 : f32 to vector<16x1xf32>
      %103 = arith.mulf %101, %102 : vector<16x1xf32>
      %cst_39 = arith.constant 0.899999976 : f32
      %104 = vector.broadcast %cst_39 : f32 to vector<16x1xf32>
      %105 = arith.mulf %104, %95 : vector<16x1xf32>
      %cst_40 = arith.constant 1.000000e-01 : f32
      %106 = vector.broadcast %cst_40 : f32 to vector<16x1xf32>
      %107 = arith.mulf %106, %103 : vector<16x1xf32>
      %108 = arith.addf %105, %107 : vector<16x1xf32>
      %cst_41 = arith.constant 0.000000e+00 : f32
      %109 = vector.broadcast %cst_41 : f32 to vector<16x1xf32>
      %110 = arith.select %22, %108, %109 : vector<16x1xi1>, vector<16x1xf32>
      %111 = vector.shape_cast %110 : vector<16x1xf32> to vector<1x16x1xf32>
      %cst_42 = arith.constant dense<0.000000e+00> : vector<1xf32>
      %112 = vector.multi_reduction <add>, %111, %cst_42 [1, 2] : vector<1x16x1xf32> to vector<1xf32>
      %113 = vector.shape_cast %112 : vector<1xf32> to vector<1x1x1xf32>
      %114 = vector.extract %113[0, 0, 0] : f32 from vector<1x1x1xf32>
      %cst_43 = arith.constant 0.000000e+00 : f32
      %115 = arith.addf %cst_43, %114 : f32
      %116 = tpu.iota {dimensions = array<i32: 1>} : vector<1x8x128xi32>
      %117 = tpu.iota {dimensions = array<i32: 2>} : vector<1x8x128xi32>
      %c0_i32_44 = arith.constant 0 : i32
      %118 = vector.broadcast %c0_i32_44 : i32 to vector<1x8x128xi32>
      %119 = arith.cmpi eq, %116, %118 : vector<1x8x128xi32>
      %c0_i32_45 = arith.constant 0 : i32
      %120 = vector.broadcast %c0_i32_45 : i32 to vector<1x8x128xi32>
      %121 = arith.cmpi eq, %117, %120 : vector<1x8x128xi32>
      %122 = arith.andi %119, %121 : vector<1x8x128xi1>
      %c0_i32_46 = arith.constant 0 : i32
      %123 = vector.broadcast %c0_i32_46 : i32 to vector<1x8x128xi32>
      %124 = arith.cmpi eq, %116, %123 : vector<1x8x128xi32>
      %c1_i32 = arith.constant 1 : i32
      %125 = vector.broadcast %c1_i32 : i32 to vector<1x8x128xi32>
      %126 = arith.cmpi eq, %117, %125 : vector<1x8x128xi32>
      %127 = arith.andi %124, %126 : vector<1x8x128xi1>
      %cst_47 = arith.constant 0.000000e+00 : f32
      %128 = vector.broadcast %115 : f32 to vector<1x8x128xf32>
      %129 = vector.broadcast %cst_47 : f32 to vector<1x8x128xf32>
      %130 = arith.select %127, %128, %129 : vector<1x8x128xi1>, vector<1x8x128xf32>
      %131 = vector.broadcast %71 : f32 to vector<1x8x128xf32>
      %132 = arith.select %122, %131, %130 : vector<1x8x128xi1>, vector<1x8x128xf32>
      %c0_48 = arith.constant 0 : index
      %c0_49 = arith.constant 0 : index
      %c0_50 = arith.constant 0 : index
      %133 = vector.load %arg8[%c0_48, %c0_49, %c0_50] : memref<1x8x128xf32, #tpu.memory_space<vmem>>, vector<1x8x128xf32>
      tpu.vector_store %arg8[%c0_48, %c0_49, %c0_50], %132 {strides = array<i32>} : memref<1x8x128xf32, #tpu.memory_space<vmem>>, vector<1x8x128xf32>,
    } else {
    }
    return
  }
  func.func @transform_0(%arg0: i32, %arg1: i32) -> (i32, i32) {
    %c0_i32 = arith.constant 0 : i32
    return %arg0, %arg1 : i32, i32
  }
  func.func @transform_1(%arg0: i32, %arg1: i32) -> (i32, i32) {
    %c0_i32 = arith.constant 0 : i32
    %c0_i32_0 = arith.constant 0 : i32
    return %arg1, %c0_i32 : i32, i32
  }
  func.func @transform_2(%arg0: i32, %arg1: i32) -> (i32, i32) {
    %c0_i32 = arith.constant 0 : i32
    %c0_i32_0 = arith.constant 0 : i32
    %c0_i32_1 = arith.constant 0 : i32
    return %c0_i32, %c0_i32_0 : i32, i32
  }
  func.func @transform_3(%arg0: i32, %arg1: i32) -> (i32, i32) {
    %c0_i32 = arith.constant 0 : i32
    %c0_i32_0 = arith.constant 0 : i32
    return %arg0, %c0_i32 : i32, i32
  }
  func.func @transform_4(%arg0: i32, %arg1: i32) -> (i32, i32) {
    %c0_i32 = arith.constant 0 : i32
    %c0_i32_0 = arith.constant 0 : i32
    return %arg0, %c0_i32 : i32, i32
  }
  func.func @transform_5(%arg0: i32, %arg1: i32) -> (i32, i32) {
    %c0_i32 = arith.constant 0 : i32
    %c0_i32_0 = arith.constant 0 : i32
    return %arg0, %c0_i32 : i32, i32
  }
  func.func @transform_6(%arg0: i32, %arg1: i32) -> (i32, i32, i32) {
    %c0_i32 = arith.constant 0 : i32
    %c0_i32_0 = arith.constant 0 : i32
    %c0_i32_1 = arith.constant 0 : i32
    return %arg0, %c0_i32, %c0_i32_0 : i32, i32, i32
  }
}

</mosaic_0001>

<bundles_post_ra>
// kernel: tpu_custom_call.1
= control target key start
LH: loop header
LB: loop body
LE: loop exit
PB: predicated region body
PF: predicated region fallthrough
CT: control target
= control target key end

     0   :  { %s1563_s0 = inlined_call_operand.hbm [shape: bf16[16,1024], index: 0, kind: input, shape index: {}]   ;;  %s1564_s1 = inlined_call_operand.hbm [shape: bf16[1024,128], index: 1, kind: input, shape index: {}]   ;;  %s1565_s2 = inlined_call_operand.vmem [shape: f32[1,128], index: 2, kind: input, shape index: {}]   ;;  %s1566_s3 = inlined_call_operand.vmem [shape: f32[16,128], index: 3, kind: input, shape index: {}]   ;;  %s1567_s4 = inlined_call_operand.hbm [shape: f32[16,128], index: 4, kind: input, shape index: {}]   ;;  %s1568_s5 = inlined_call_operand.vmem [shape: s32[16,1], index: 5, kind: input, shape index: {}]   ;;  %s1569_s6 = inlined_call_operand.hbm [shape: f32[1,8,128], index: 6, kind: output, shape index: {}]  }
   0x1   :  { %1575 = sst [smem:[#allocation18_spill]] %s1563_s0 }
   0x2   :  { %1576 = sst [smem:[#allocation19_spill]] %s1567_s4 }
   0x3   :  { %11 = vsyncpa [#allocation4], 0 }
   0x4   :  { %13 = vsyncpa [#allocation4 + $0x1], 0 }
   0x5   :  { %14 = vsyncpa [#allocation7], 0 }
   0x6   :  { %16 = vsyncpa [#allocation7 + $0x1], 0 }
   0x7   :  { %17 = vsyncpa [#allocation5], 0  ;;  %s1375_s21 = smov 0   ;;  %s1377_s22 = smov 0  }
   0x8   :  { %s1379_s23 = smov 0   ;;  %s1381_s24 = smov 0  }
   0x9   :  { %s1383_s25 = smov 0   ;;  %s1385_s26 = smov 0  }
   0xa LB: > { %1577 = sst [smem:[#allocation14_spill]] %s1318_s23  ;;  %s1404_s27 = sadd.s32 4294967295, %s1330_s26   ;;  %s1330_s26 = sphi %s1385_s26, %s23_s26   ;;  %s1326_s25 = sphi %s1383_s25, %s1596_s25   ;;  %s1322_s24 = sphi %s1381_s24, %s1595_s24   ;;  %s1318_s23 = sphi %s1379_s23, %s1591_s23   ;;  %s1314_s22 = sphi %s1377_s22, %s1594_s22   ;;  %s1310_s21 = sphi %s1375_s21, %s1593_s21  }
   0xb   : > { %1578 = sst [smem:[#allocation15_spill]] %s1330_s26  ;;  %p57_p0 = scmp.ne.s32.totalorder %s1314_s22, %s1310_s21 }
   0xc   : > { %p58_p1 = scmp.eq.s32.totalorder %s1404_s27, 0  ;;  %p931_p2 = scmp.ge.s32.totalorder %s1330_s26, 1 }
   0xd   : > { %p219_p3 = scmp.lt.s32.totalorder %s1330_s26, 5  ;;  %s1580_s4 = sld [smem:[#allocation19_spill]] }
   0xe   : > { %p1412_p4 = por %p58_p1, %p57_p0  ;;  %s1332_s9 = smov [#allocation8]  }
   0xf   : > { %p1419_p5 = pnand %p931_p2, %p219_p3  ;;  %s247_s10 = sshll.u32 %s1332_s9, 4  ;;  %s248_s10 = int_to_ptr.vmem [resolvable:$true] %s247_s10 }
  0x10   : > { %s1570_s11 = smov 128   ;;  %s1571_s12 = smov 8  }
  0x11   : > { %p1061_p6 = pneg %p1419_p5  ;;  %s32_s13 = sadd.s32 1, %s1326_s25 }
  0x12   : > { %p33_p8 = scmp.ge.s32.totalorder %s32_s13, 4  ;;  %s44_s14 = sadd.s32 1, %s1318_s23 }
  0x13   : > { %s245_s7 = sshll.u32 %s1580_s4, 4  ;;  %p1062_p7 = pnand %p1061_p6, %p58_p1  ;;  %s246_s7 = int_to_ptr.hbm [resolvable:$true] %s245_s7 }
  0x14   : > { %p51_p9 = scmp.ne.s32.totalorder %s1318_s23, %s1314_s22  ;;  %p52_p10 = scmp.eq.s32.totalorder %s1330_s26, 0 }
  0x15   : > { %1064 = dma.hbm_to_vmem [thread:$0]  (!%p1062_p7), %s246_s7, 256, %s248_s10, [#allocation7], %s1570_s11, %s1570_s11, %s1571_s12  }
  0x16   : > { %s1598_s13 = smov (%p33_p8, %s32_s13), 0  ;;  %p1437_p11 = por %p52_p10, %p51_p9 }
  0x17   : > { %1582 = sst [smem:[#allocation16_spill]] %s1598_s13  ;;  %p1073_p12 = scmp.lt.s32.totalorder %s1330_s26, 4 }
  0x18   : > { %s40_s16 = ssub.s32 %s1326_s25, %s1598_s13  ;;  %s270_s17 = sand.u32 1, %s1318_s23  }
  0x19   : > { %p42_p13 = scmp.eq.s32.totalorder %s40_s16, 0  ;;  %s936_s18 = sshll.u32 %s270_s17, 4 }
  0x1a   : > { %s1025_s19 = sshll.u32 %s1326_s25, 3  ;;  %s1585_s0 = sld [smem:[#allocation18_spill]] }
  0x1b   : > { %s1447_s20 = scalar_select %p42_p13, %s1318_s23, %s44_s14  }
  0x1c   : > { %s274_s9 = scalar_lea.vmem [#allocation3], %s936_s18  ;;  %p1456_p0 = pnand %p1073_p12, %p1437_p11 }
  0x1d   : > { %1584 = sst [smem:[#allocation17_spill]] %s1447_s20  ;;  %s285_s10 = sshll.u32 %s274_s9, 4  ;;  %s286_s10 = int_to_ptr.vmem [resolvable:$true] %s285_s10 }
  0x1e   : > { %s295_s16 = sand.u32 1, %s1330_s26   ;;  %s939_s14 = sshll.u32 %s270_s17, 7 }
  0x1f   : > { %s271_s12 = scalar_lea.sflag [#allocation4], %s270_s17  ;;  %s1335_s4 = smov 512  }
  0x20   : > { %s282_s30 = scalar_lea.hbm %s1585_s0, %s1025_s19  ;;  %s1587_s21 = smov 8  }
  0x21   : > { %s283_s7 = sshll.u32 %s282_s30, 4  ;;  %s1588_s19 = smov 128   ;;  %s284_s7 = int_to_ptr.hbm [resolvable:$true] %s283_s7 }
  0x22   : > { %1068 = dma.hbm_to_vmem [thread:$0]  (!%p1456_p0), %s284_s7, 256, %s286_s10, %s271_s12, %s1335_s4, %s1588_s19, %s1587_s21  }
  0x23   : > { %s1026_s18 = sshll.u32 %s1326_s25, 7  ;;  %s299_s9 = scalar_lea.vmem [#allocation6], %s939_s14 }
  0x24   : > { %s304_s15 = scalar_lea.hbm %s1564_s1, %s1026_s18  ;;  %s307_s0 = sshll.u32 %s299_s9, 4  ;;  %s308_s0 = int_to_ptr.vmem [resolvable:$true] %s307_s0 }
  0x25   : > { %s305_s13 = sshll.u32 %s304_s15, 4  ;;  %s296_s20 = scalar_lea.sflag [#allocation7], %s295_s16  ;;  %s306_s13 = int_to_ptr.hbm [resolvable:$true] %s305_s13 }
  0x26   : > { %s1336_s23 = smov 64   ;;  %s1337_s26 = smov 4  }
  0x27   : > { %1071 = dma.hbm_to_vmem [thread:$0]  (!%p1456_p0), %s306_s13, 2048, %s308_s0, %s296_s20, %s1336_s23, %s1336_s23, %s1337_s26  }
  0x28   : > { %319 = sbr.rel (%p1419_p5) target bundleno = 814 (0x32e), region = 44  ;;  %s321_s4 = sand.u32 (!%p1419_p5), 1, %s1314_s22  }
  0x29   : > { %s943_s12 = sshll.u32 (!%p1419_p5), %s321_s4, 4  ;;  %s322_s17 = scalar_lea.sflag (!%p1419_p5), [#allocation4], %s321_s4 }
  0x2a   : > { %s1474_s7 = scalar_lea.vmem (!%p1419_p5), [#allocation3], %s943_s12 }
  0x2d   : > { %1293 = dma.done.wait (%p1412_p4), %s322_s17, 256  }
  0x2e   : > { %1295 = vsyncadd (%p1412_p4), %s322_s17, 4294967040  ;;  %s331_s10 = sand.u32 1, %s1404_s27   ;;  %s944_s11 = sshll.u32 %s321_s4, 7 }
  0x2f   : > { %s332_s0 = scalar_lea.sflag [#allocation7], %s331_s10  ;;  %s1481_s23 = scalar_lea.vmem [#allocation6], %s944_s11 }
  0x30   : > { %1297 = dma.done.wait (%p1412_p4), %s332_s0, 2048  }
  0x31   : > { %1299 = vsyncadd (%p1412_p4), %s332_s0, 4294965248 }
  0x32   : > { %1301 = dma.done.wait (%p58_p1), [#allocation7], 256  }
  0x33   : > { %1303 = vsyncadd (%p58_p1), [#allocation7], 4294967040  ;;  %v1036_v0 = vld [vmem:[%s1481_s23 + $0x38] sm:$0xff]  ;;  %v1035_v2 = vld [vmem:[%s1481_s23 + $0x30] sm:$0xff]  ;;  %p1018_p1 = scmp.ne.s32.totalorder %s1322_s24, 0 }
  0x34   : > { %v1044_v1 = vld [vmem:[%s1481_s23 + $0x78] sm:$0xff]  ;;  %536 = vmatpush.bf16.msra.mxu0 %v1036_v0  ;;  %v1043_v3 = vld [vmem:[%s1481_s23 + $0x70] sm:$0xff]  ;;  %v1034_v4 = vld [vmem:[%s1481_s23 + $0x28] sm:$0xff] }
  0x35   : > { %550 = vmatpush.bf16.msra.mxu1 %v1044_v1  ;;  %v1042_v5 = vld [vmem:[%s1481_s23 + $0x68] sm:$0xff]  ;;  %v1033_v6 = vld [vmem:[%s1481_s23 + $0x20] sm:$0xff]  ;;  %v1032_v8 = vld [vmem:[%s1481_s23 + $0x18] sm:$0xff] }
  0x36   : > { %v1041_v7 = vld [vmem:[%s1481_s23 + $0x60] sm:$0xff]  ;;  %v1040_v9 = vld [vmem:[%s1481_s23 + $0x58] sm:$0xff]  ;;  %v1031_v10 = vld [vmem:[%s1481_s23 + $0x10] sm:$0xff] }
  0x37   : > { %v1039_v11 = vld [vmem:[%s1481_s23 + $0x50] sm:$0xff]  ;;  %v1030_v12 = vld [vmem:[%s1481_s23 + $0x8] sm:$0xff]  ;;  %v1029_v14 = vld [vmem:[%s1481_s23] sm:$0xff] }
  0x38   : > { %537 = vmatpush.bf16.msra.mxu0 %v1035_v2  ;;  %v1038_v13 = vld [vmem:[%s1481_s23 + $0x48] sm:$0xff]  ;;  %v1037_v15 = vld [vmem:[%s1481_s23 + $0x40] sm:$0xff] }
  0x39   : > { %551 = vmatpush.bf16.msra.mxu1 %v1043_v3  ;;  %v948_v16 = vld [vmem:[%s1474_s7] sm:$0xf]  ;;  %v1028_v17 = vld [vmem:[%s1474_s7 + $0x4] sm:$0xf0]  ;;  %v1027_v18 = vld [vmem:[%s1474_s7 + $0x4] sm:$0xf] }
  0x3a   : > { %v950_v19 = vld [vmem:[%s1474_s7 + $0x8] sm:$0xf0]  ;;  %v949_v20 = vor.u32 %v1028_v17, %v948_v16 }
  0x3b   : > { %v953_v21 = vor.u32 %v1027_v18, %v950_v19 }
  0x3c   : > { %538 = vmatpush.bf16.msra.mxu0 %v1034_v4 }
  0x3d   : > { %552 = vmatpush.bf16.msra.mxu1 %v1042_v5 }
  0x40   : > { %539 = vmatpush.bf16.msra.mxu0 %v1033_v6 }
  0x41   : > { %553 = vmatpush.bf16.msra.mxu1 %v1041_v7 }
  0x44   : > { %540 = vmatpush.bf16.msra.mxu0 %v1032_v8 }
  0x45   : > { %554 = vmatpush.bf16.msra.mxu1 %v1040_v9 }
  0x48   : > { %541 = vmatpush.bf16.msra.mxu0 %v1031_v10 }
  0x49   : > { %555 = vmatpush.bf16.msra.mxu1 %v1039_v11 }
  0x4c   : > { %542 = vmatpush.bf16.msra.mxu0 %v1030_v12 }
  0x4d   : > { %556 = vmatpush.bf16.msra.mxu1 %v1038_v13 }
  0x50   : > { %543 = vmatpush.bf16.msra.mxu0 %v1029_v14 }
  0x51   : > { %557 = vmatpush.bf16.msra.mxu1 %v1037_v15 }
  0x53   : > { %544 = vmatmul.bf16.vlgmr.msra.gmra.mxu0 %v949_v20 }
  0x54   : > { %558 = vmatmul.bf16.vlgmr.msra.gmra.mxu1 %v953_v21 }
  0xd0   : > { %v545_v22 = vpop.f32.mrf.mxu0 }
  0xd1   : > { %v559_v23 = vpop.f32.mrf.mxu1 }
  0xd2   : > { %v560_v24 = vadd.f32 %v559_v23, %v545_v22 }
  0xd6   : > { %567 = sbr.rel (%p1018_p1) target bundleno = 221 (0xdd), region = 60 }
  0xd8   : > { %v547_v25 = vpop.f32.mrf.mxu0 }
  0xd9   : > { %v561_v26 = vpop.f32.mrf.mxu1 }
  0xda   : > { %v562_v27 = vadd.f32 %v561_v26, %v547_v25 }
  0xdb   : > { %568 = vst [vmem:[#allocation2] sm:$0xff] %v560_v24 }
  0xdc   : > { %569 = vst [vmem:[#allocation2 + $0x8] sm:$0xff] %v562_v27 }
  0xdd PF: > { %p1019_p2 = scmp.le.s32.totalorder %s1322_s24, 0 }
  0xdf   : > { %573 = sbr.rel (%p1019_p2) target bundleno = 233 (0xe9), region = 64 }
  0xe4   : > { %v574_v28 = vld [vmem:[#allocation2] sm:$0xff]  ;;  %v575_v29 = vld [vmem:[#allocation2 + $0x8] sm:$0xff] }
  0xe5   : > { %v576_v30 = vadd.f32 %v574_v28, %v560_v24  ;;  %v577_v31 = vadd.f32 %v575_v29, %v562_v27 }
  0xe7   : > { %578 = vst [vmem:[#allocation2] sm:$0xff] %v576_v30 }
  0xe8   : > { %579 = vst [vmem:[#allocation2 + $0x8] sm:$0xff] %v577_v31 }
  0xe9 PF: > { %p1020_p3 = scmp.ne.s32.totalorder %s1322_s24, 3 }
  0xeb   : > { %583 = sbr.rel (%p1020_p3) target bundleno = 808 (0x328), region = 68 }
  0xf0   : > { %v584_v32 = vlaneseq  ;;  %v658_v33 = vld [vmem:[#allocation8] sm:$0xff]  ;;  %v597_v35 = vld [vmem:[#allocation2] sm:$0xff]  ;;  %v1338_v37 = vmov 0   ;;  %vm767_vm6 = vcmask 7168  }
  0xf1   : > { %v660_v34 = vmul.f32 0.33333334, %v658_v33  ;;  %v1135_v36 = vld [vmem:[%s1565_s2] ss:$0 sm:$0xff]  ;;  %1133 = vset.pattern.permute.xlu2 %v1338_v37  ;;  %1134 = vset.pattern.permute.xlu0 %v1338_v37 }
  0xf2   : > { %v731_v38 = vld [vmem:[%s1568_s5] sm:$0xff]  ;;  %v1521_v39 = vand.u32 127, %v584_v32  ;;  %v602_v41 = vadd.f32 %v1135_v36, %v597_v35 }
  0xf3   : > { %v707_v40 = vld [vmem:[%s1566_s3] sm:$0xff]  ;;  %734 = vperm.xlu2 %1133, %v731_v38  }
  0xf4   : > { %vm586_vm0 = vcmp.lt.s32.totalorder %v1521_v39, 32  ;;  %v604_v44 = vmul.f32 0.33333334, %v602_v41  ;;  %vm784_vm8 = vcmp.eq.s32.totalorder %v1521_v39, 1  ;;  %vm782_vm9 = vcmp.eq.s32.totalorder %v1521_v39, 0 }
  0xf5   : > { %v709_v42 = vsel %vm586_vm0, %v707_v40, -1e+30  ;;  %v662_v43 = vsel %vm586_vm0, %v660_v34, -1e+30 }
  0xf6   : > { %711 = vmax.xlane.f32.xlu0 %v709_v42  ;;  %664 = vmax.xlane.f32.xlu1 %v662_v43  ;;  %v606_v45 = vsel %vm586_vm0, %v604_v44, -1e+30 }
  0xfe   : > { %608 = vmax.xlane.f32.xlu0 %v606_v45 }
 0x14d   : > { %v735_v58 = vpop.permute.xlu2 %734 }
 0x14e   : > { %vm739_vm1 = vcmp.eq.s32.totalorder %v1521_v39, %v735_v58 }
 0x169   : > { %v712_v46 = vpop.xlane.xlu0 %711  ;;  %v665_v47 = vpop.xlane.xlu1 %664 }
 0x16a   : > { %v715_v48 = vsub.f32 %v709_v42, %v712_v46  ;;  %v668_v49 = vsub.f32 %v662_v43, %v665_v47 }
 0x16c   : > { %v717_v50 = vmul.f32 1.442695, %v715_v48  ;;  %v670_v51 = vmul.f32 1.442695, %v668_v49 }
 0x16e   : > { %1136 = vpow2.f32 %v717_v50 }
 0x16f   : > { %1138 = vpow2.f32 %v670_v51 }
 0x171   : > { %v609_v52 = vpop.xlane.xlu0 %608 }
 0x172   : > { %v612_v53 = vsub.f32 %v606_v45, %v609_v52 }
 0x174   : > { %v1137_v54 = vpop.eup %1136  ;;  %v614_v55 = vmul.f32 1.442695, %v612_v53 }
 0x175   : > { %v1139_v56 = vpop.eup %1138  ;;  %721 = vadd.xlane.f32.xlu1 %v1137_v54 }
 0x176   : > { %1140 = vpow2.f32 %v614_v55  ;;  %674 = vadd.xlane.f32.xlu0 %v1139_v56 }
 0x17c   : > { %v1141_v57 = vpop.eup %1140 }
 0x17d   : > { %618 = vadd.xlane.f32.xlu2 %v1141_v57 }
 0x1e8   : > { %v722_v59 = vpop.xlane.xlu1 %721 }
 0x1e9   : > { %1142 = vlog2.f32 %v722_v59  ;;  %v675_v63 = vpop.xlane.xlu0 %674 }
 0x1ef   : > { %v1143_v60 = vpop.eup %1142 }
 0x1f0   : > { %v726_v61 = vmul.f32 0.6931472, %v1143_v60  ;;  %v619_v62 = vpop.xlane.xlu2 %618 }
 0x1f1   : > { %1144 = vlog2.f32 %v619_v62  ;;  %vm633_vm2 = vweird.f32 %v619_v62  ;;  %v639_v7 = vand.u32 2147483648, %v619_v62  ;;  %v637_v10 = vand.u32 2147483647, %v619_v62 }
 0x1f2   : > { %1146 = vrcp.f32 %v619_v62  ;;  %v729_v0 = vsub.f32 %v715_v48, %v726_v61  ;;  %v590_v48 = vshrl.u32 %v584_v32, 7 }
 0x1f3   : > { %1148 = vlog2.f32 %v675_v63  ;;  %v640_v13 = vor.u32 1.1754944e-38, %v639_v7  ;;  %vm638_vm5 = vcmp.eq.f32.partialorder %v637_v10, 8.507059e+37 }
 0x1f4   : > { %v749_v1 = vsel %vm586_vm0, %v729_v0, 0.0  ;;  %v741_v2 = vsel %vm739_vm1, %v729_v0, 0.0  ;;  %vm781_vm7 = vcmp.eq.s32.totalorder %v590_v48, 0 }
 0x1f5   : > { %751 = vadd.xlane.f32.xlu1 %v749_v1  ;;  %743 = vadd.xlane.f32.xlu0 %v741_v2  ;;  %vm785_vm10 = vmand %vm781_vm7, %vm784_vm8 }
 0x1f6   : > { %vm783_vm11 = vmand %vm781_vm7, %vm782_vm9 }
 0x1f7   : > { %v1145_v3 = vpop.eup %1144 }
 0x1f8   : > { %v1147_v4 = vpop.eup %1146  ;;  %v623_v9 = vmul.f32 0.6931472, %v1145_v3 }
 0x1f9   : > { %v629_v5 = vmul.f32 %v1147_v4, %v619_v62  ;;  %v1149_v6 = vpop.eup %1148  ;;  %vm634_vm3 = vweird.f32 %v1147_v4 }
 0x1fa   : > { %v679_v11 = vmul.f32 0.6931472, %v1149_v6  ;;  %vm635_vm4 = vmor %vm633_vm2, %vm634_vm3  ;;  %v626_v14 = vsub.f32 %v612_v53, %v623_v9 }
 0x1fb   : > { %v630_v8 = vsub.f32 1.0, %v629_v5 }
 0x1fc   : > { %v682_v16 = vsub.f32 %v668_v49, %v679_v11 }
 0x1fd   : > { %v631_v12 = vmul.f32 %v1147_v4, %v630_v8 }
 0x1fe   : > { %v690_v20 = vsub.f32 %v626_v14, %v682_v16 }
 0x1ff   : > { %v632_v15 = vadd.f32 %v1147_v4, %v631_v12 }
 0x201   : > { %v636_v17 = vsel %vm635_vm4, %v1147_v4, %v632_v15 }
 0x202   : > { %v641_v18 = vsel %vm638_vm5, %v640_v13, %v636_v17 }
 0x203   : > { %v642_v19 = vmul.f32 %v1141_v57, %v641_v18 }
 0x205   : > { %v692_v21 = vmul.f32 %v690_v20, %v642_v19 }
 0x207   : > { %v694_v22 = vsel %vm586_vm0, %v692_v21, 0.0 }
 0x208   : > { %697 = vadd.xlane.f32.xlu1 %v694_v22 }
 0x268   : > { %v752_v23 = vpop.xlane.xlu1 %751  ;;  %v744_v24 = vpop.xlane.xlu0 %743 }
 0x269   : > { %v755_v25 = vsub.f32 0.0, %v752_v23  ;;  %v747_v26 = vsub.f32 0.0, %v744_v24 }
 0x26b   : > { %v757_v27 = vmul.f32 0.03125, %v755_v25  ;;  %v759_v29 = vmul.f32 0.9, %v747_v26 }
 0x26d   : > { %v761_v28 = vmul.f32 0.1, %v757_v27 }
 0x26f   : > { %v763_v30 = vadd.f32 %v761_v28, %v759_v29 }
 0x271   : > { %v768_v31 = vsel %vm767_vm6, %v763_v30, 0.0 }
 0x272   : > { %771 = vadd.xlane.f32.xlu0 %v768_v31 }
 0x27b   : > { %v698_v33 = vpop.xlane.xlu1 %697 }
 0x27c   : > { %v699_v34 = vrot.slane %v698_v33, 4 }
 0x27e   : > { %v700_v35 = vadd.f32 %v699_v34, %v698_v33 }
 0x280   : > { %v701_v36 = vrot.slane %v700_v35, 2 }
 0x282   : > { %v702_v37 = vadd.f32 %v701_v36, %v700_v35 }
 0x284   : > { %v703_v38 = vrot.slane %v702_v37, 1 }
 0x286   : > { %v704_v40 = vadd.f32 %v703_v38, %v702_v37 }
 0x288   : > { %1045 = vpush %v704_v40 }
 0x2b9   : > { %s1046_s16 = spop %1045 }
 0x2ba   : > { %v788_v50 = vstv %s1046_s16 }
 0x2e5   : > { %v772_v41 = vpop.xlane.xlu0 %771 }
 0x2e6   : > { %v773_v42 = vrot.slane %v772_v41, 4 }
 0x2e8   : > { %v774_v43 = vadd.f32 %v773_v42, %v772_v41 }
 0x2ea   : > { %v775_v44 = vrot.slane %v774_v43, 2 }
 0x2ec   : > { %v776_v45 = vadd.f32 %v775_v44, %v774_v43 }
 0x2ee   : > { %v777_v46 = vrot.slane %v776_v45, 1 }
 0x2f0   : > { %v778_v47 = vadd.f32 %v777_v46, %v776_v45 }
 0x2f2   : > { %1047 = vpush %v778_v47 }
 0x323   : > { %s1048_s14 = spop %1047 }
 0x324   : > { %v786_v49 = vstv %s1048_s14 }
 0x325   : > { %v787_v51 = vsel %vm785_vm10, %v786_v49, 0.0 }
 0x326   : > { %v789_v52 = vsel %vm783_vm11, %v788_v50, %v787_v51 }
 0x327   : > { %790 = vst [vmem:[#allocation9] sm:$0xff] %v789_v52 }
 0x328 PF: > { %p1075_p4 = scmp.eq.s32.totalorder %s1404_s27, 3  ;;  %s801_s18 = sshll.u32 %s1569_s6, 4  ;;  %s802_s18 = int_to_ptr.hbm [resolvable:$true] %s801_s18 }
 0x329   : > { %s1339_s29 = smov [#allocation9]  }
 0x32a   : > { %s799_s30 = sshll.u32 %s1339_s29, 4  ;;  %s800_s30 = int_to_ptr.vmem [resolvable:$true] %s799_s30 }
 0x32b   : > { %1058 = dma.vmem_to_hbm [thread:$0]  (%p1075_p4), %s800_s30, 128, %s802_s18, [#allocation5]  }
 0x32c   : > { %1305 = dma.done.wait (%p1075_p4), [#allocation5], 128  }
 0x32d   : > { %1307 = vsyncadd (%p1075_p4), [#allocation5], 4294967168 }
 0x32e PF: > { %s1589_s15 = sld [smem:[#allocation15_spill]]  ;;  %s1593_s21 = smov %s1314_s22 }
 0x32f   : > { %s1590_s9 = sld [smem:[#allocation14_spill]]  ;;  %s1595_s24 = smov %s1326_s25 }
 0x330   : > { %s1591_s23 = sld [smem:[#allocation17_spill]] }
 0x331   : > { %s1592_s27 = sld [smem:[#allocation16_spill]] }
 0x334   : > { %s23_s26 = sadd.s32 1, %s1589_s15  }
 0x335   : > { %p20_p5 = scmp.ge.s32.totalorder %s23_s26, 6   ;;  %s1594_s22 = smov %s1590_s9 }
 0x337   : > { %s1596_s25 = smov %s1592_s27  ;;  %22 = sbr.rel (!%p20_p5) target bundleno = 10 (0xa), region = 118 }
 0x33c   :  { %815 = vsyncpa [#allocation4], 1 }
 0x33d   :  { %817 = vsyncpa [#allocation4 + $0x1], 1 }
 0x33e   :  { %818 = vsyncpa [#allocation7], 1 }
 0x33f   :  { %820 = vsyncpa [#allocation7 + $0x1], 1 }
 0x340   :  { %821 = vsyncpa [#allocation5], 1 }
 0x341   :  { %823 = vsyncpa [#allocation5 + $0x1], 1 }

</bundles_post_ra>
